<compile_context>
chip_gen: v7x
topology: tpu7x:2x2x1
jax: 0.10.0
libtpu: 0.0.40
codegen_flags: <defaults>
</compile_context>

<pallas_src>
import functools

import jax
import jax.numpy as jnp
from jax.experimental import pallas as pl
from jax.experimental.pallas import tpu as pltpu


LANE = 128  # TPU lane width; samples ride the lane axis.


def _round_up(v, m):
    return -(-v // m) * m


def _mlp_kernel(x_ref, vec_ref, w_ref, o_ref, *, num_layers):
    """x_ref:(1,tile_n) vec_ref:(P,>=128) w_ref:(num_layers,P,P) o_ref:(1,tile_n)."""
    x = x_ref[...]                                         # (1, tile_n) lane-dense samples

    # --- first layer Linear(1 -> L): column(w0) x row(x) broadcast FMA (VPU) ---
    w0 = vec_ref[:, 0:1]                                   # (P, 1), zero beyond layer_size
    b0 = vec_ref[:, 1:2]                                   # (P, 1)
    h = jnp.tanh(w0 * x + b0)                              # (P, tile_n); padded sublanes stay 0

    # --- hidden layers Linear(L -> L): (P,P) @ (P,tile_n) matmuls on the MXU ---
    # TODO(synk): on v5e/v6e, split the tile into two independent lane halves and
    # interleave the per-layer chains so MXU result pops overlap the tanh (EUP).
    for i in range(num_layers):
        b = vec_ref[:, 2 + i:3 + i]                        # (P, 1)
        h = jnp.tanh(
            jnp.dot(w_ref[i], h, preferred_element_type=jnp.float32) + b
        )                                                  # padded sublanes stay exactly 0

    # --- last layer Linear(L -> 1): VPU multiply + sublane reduce -> (1, tile_n) ---
    w_end = vec_ref[:, 2 + num_layers:3 + num_layers]      # (P, 1)
    b_end = vec_ref[0:1, 3 + num_layers:4 + num_layers]    # (1, 1)
    out = jnp.sum(h * w_end, axis=0, keepdims=True) + b_end
    o_ref[...] = out.astype(o_ref.dtype)                   # lane-dense, unmasked store


def pack_params(params, lane=LANE):
    """Pack [(W,b), ...] (W:(in,out), b:(1,out)) into column-major param slabs."""
    (w0, b0) = params[0]
    hidden = params[1:-1]
    (w_end, b_end) = params[-1]
    num_layers = len(hidden)
    layer_size = w0.shape[1]
    P = _round_up(layer_size, 8)                           # sublane-padded feature dim

    assert num_layers >= 1, "expect at least one hidden (layer_size x layer_size) layer"
    assert w0.shape[0] == 1, "kernel's first-layer path assumes D_in == 1"
    assert w_end.shape[1] == 1, "kernel's reduction path assumes D_out == 1"

    def col(v):
        v = jnp.reshape(jnp.asarray(v, jnp.float32), (-1, 1))
        return jnp.pad(v, ((0, P - v.shape[0]), (0, 0)))

    cols = [col(w0[0, :]), col(b0[0, :])]                  # first-layer weight + bias columns
    for (_, b) in hidden:
        cols.append(col(b[0, :]))                          # hidden biases
    cols.append(col(w_end[:, 0]))                          # last-layer weight column
    cols.append(col(jnp.reshape(b_end, (1,))))             # last-layer bias (sublane 0)
    vec = jnp.concatenate(cols, axis=1)                    # (P, num_layers + 4)
    c_pad = _round_up(vec.shape[1], lane)
    vec = jnp.pad(vec, ((0, 0), (0, c_pad - vec.shape[1])))

    # Hidden weights stored TRANSPOSED so h_col_new = W.T @ h_col, zero-padded to (P, P).
    w_slab = jnp.stack(
        [jnp.pad(jnp.asarray(w, jnp.float32).T,
                 ((0, P - w.shape[1]), (0, P - w.shape[0])))
         for (w, _) in hidden],
        axis=0,
    )                                                      # (num_layers, P, P)
    return vec, w_slab, num_layers


def mul_layer_net_forward(x, params, *, tile_n=1024):
    """params ordered [linearstart, *linears, linearend]; W:(in,out), b:(1,out)."""
    vec, w_slab, num_layers = pack_params(params)
    n, d_in = x.shape
    assert d_in == 1, "MulLayerNet here is the 1-D harmonic net (D_in == 1)"

    # Row tile: multiple of the 128-lane width, big enough to amortize the
    # ~0.35us per-step pipeline overhead, capped so small N still yields a
    # >= 2-step "parallel" grid (keeps both v7x TensorCores busy).
    tile_n = max(LANE, (tile_n // LANE) * LANE)
    n_ceil = _round_up(n, LANE)
    tile_n = min(tile_n, n_ceil)
    if n_ceil >= 2 * LANE:
        tile_n = min(tile_n, _round_up(n_ceil // 2, LANE))
    n_pad = _round_up(n, tile_n)

    # Lane-dense input row (1, n_pad): dense DMA in, unmasked full-lane store out.
    x_row = jnp.pad(x, ((0, n_pad - n), (0, 0))).reshape(1, n_pad)

    # TODO(synk): the two resident param slabs could use pipeline_mode=pl.Buffered(1)
    # to skip pointless double-buffering; footprint here is a few KiB, so left default.
    out = pl.pallas_call(
        functools.partial(_mlp_kernel, num_layers=num_layers),
        out_shape=jax.ShapeDtypeStruct((1, n_pad), x.dtype),
        grid_spec=pltpu.PrefetchScalarGridSpec(
            num_scalar_prefetch=0,
            grid=(n_pad // tile_n,),
            in_specs=[
                pl.BlockSpec((1, tile_n), lambda i: (0, i)),       # x row: tiled over lanes
                pl.BlockSpec(vec.shape, lambda i: (0, 0)),         # param vec slab: resident
                pl.BlockSpec(w_slab.shape, lambda i: (0, 0, 0)),   # hidden W slab: resident
            ],
            out_specs=pl.BlockSpec((1, tile_n), lambda i: (0, i)),
        ),
        compiler_params=pltpu.CompilerParams(
            dimension_semantics=("parallel",),   # row tiles are independent (v7x: 2 TCs)
        ),
    )(x_row, vec, w_slab)
    return out.reshape(n_pad, 1)[:n]


def init_params(key, d_in, num_layers, layer_size, d_out):
    """PyTorch nn.Linear default init (U(-k, k), k = 1/sqrt(fan_in)); W stored as (in, out)."""
    dims = [(d_in, layer_size)] + [(layer_size, layer_size)] * num_layers + [(layer_size, d_out)]
    params = []
    for (fan_in, fan_out) in dims:
        key, kw, kb = jax.random.split(key, 3)
        k = 1.0 / jnp.sqrt(jnp.float32(fan_in))
        w = jax.random.uniform(kw, (fan_in, fan_out), jnp.float32, -k, k)
        b = jax.random.uniform(kb, (1, fan_out), jnp.float32, -k, k)
        params.append((w, b))
    return params


def reference_forward(x, params):
    h = x
    for i, (w, b) in enumerate(params):
        h = jnp.dot(h, w, precision=jax.lax.Precision.HIGHEST) + b
        if i < len(params) - 1:
            h = jnp.tanh(h)
    return h


if __name__ == "__main__":
    # Module config matching the PyTorch script (D_in = D_out = 1, tanh MLP).
    N = 256           # sampling points; yields a 2-step row grid (tile_n capped at 128)
    D_IN = 1
    NUM_LAYERS = 2    # len(self.linears)
    LAYER_SIZE = 32
    D_OUT = 1
    SCALE = 20.0

    key = jax.random.PRNGKey(0)
    params = init_params(key, D_IN, NUM_LAYERS, LAYER_SIZE, D_OUT)

    # input_x = np.linspace(-Scale, Scale, N).reshape(-1, 1)
    x = jnp.linspace(-SCALE, SCALE, N, dtype=jnp.float32).reshape(-1, 1)

    y = mul_layer_net_forward(x, params)
    y = jax.block_until_ready(y)

    y_ref = reference_forward(x, params)
    assert y.shape == (N, D_OUT)
    # Kernel matmuls use the MXU's default f32 path; reference pins HIGHEST, so the
    # comparison tolerance is intentionally 1e-4 (a real bug would be O(1) off).
    assert jnp.allclose(y, y_ref, atol=1e-4, rtol=1e-4), "Pallas output mismatch vs JAX reference"

    print("KERNEL_OK")
</pallas_src>

<mosaic_0001>
module attributes {stable_mosaic.version = 11 : i64} {
  func.func @_mlp_kernel(%arg0: i32, %arg1: memref<1x128xf32, #tpu.memory_space<vmem>>, %arg2: memref<32x128xf32, #tpu.memory_space<vmem>>, %arg3: memref<2x32x32xf32, #tpu.memory_space<vmem>>, %arg4: memref<1x128xf32, #tpu.memory_space<vmem>>) attributes {dimension_semantics = [#tpu.dimension_semantics<parallel>], iteration_bounds = array<i64: 2>, scalar_prefetch = 0 : i64, scratch_operands = 0 : i64, tpu.core_type = #tpu.core_type<tc>, window_params = [{transform_indices = @transform_0, window_bounds = array<i64: 1, 128>}, {pipeline_mode = #tpu.pipeline_mode<synchronous>, transform_indices = @transform_1, window_bounds = array<i64: 32, 128>}, {pipeline_mode = #tpu.pipeline_mode<synchronous>, transform_indices = @transform_2, window_bounds = array<i64: 2, 32, 32>}, {transform_indices = @transform_3, window_bounds = array<i64: 1, 128>}]} {
    %c0 = arith.constant 0 : index
    %c0_0 = arith.constant 0 : index
    %0 = vector.load %arg1[%c0, %c0_0] : memref<1x128xf32, #tpu.memory_space<vmem>>, vector<1x128xf32>
    %c0_1 = arith.constant 0 : index
    %c0_2 = arith.constant 0 : index
    %1 = vector.load %arg2[%c0_1, %c0_2] : memref<32x128xf32, #tpu.memory_space<vmem>>, vector<32x1xf32>
    %c0_3 = arith.constant 0 : index
    %c1 = arith.constant 1 : index
    %2 = vector.load %arg2[%c0_3, %c1] : memref<32x128xf32, #tpu.memory_space<vmem>>, vector<32x1xf32>
    %3 = vector.broadcast %1 : vector<32x1xf32> to vector<32x128xf32>
    %4 = vector.broadcast %0 : vector<1x128xf32> to vector<32x128xf32>
    %5 = arith.mulf %3, %4 : vector<32x128xf32>
    %6 = vector.broadcast %2 : vector<32x1xf32> to vector<32x128xf32>
    %7 = arith.addf %5, %6 : vector<32x128xf32>
    %8 = math.tanh %7 : vector<32x128xf32>
    %c0_4 = arith.constant 0 : index
    %c2 = arith.constant 2 : index
    %9 = vector.load %arg2[%c0_4, %c2] : memref<32x128xf32, #tpu.memory_space<vmem>>, vector<32x1xf32>
    %c0_5 = arith.constant 0 : index
    %c0_6 = arith.constant 0 : index
    %c0_7 = arith.constant 0 : index
    %10 = vector.load %arg3[%c0_5, %c0_6, %c0_7] : memref<2x32x32xf32, #tpu.memory_space<vmem>>, vector<1x32x32xf32>
    %11 = vector.shape_cast %10 : vector<1x32x32xf32> to vector<32x32xf32>
    %cst = arith.constant dense<0.000000e+00> : vector<32x128xf32>
    %12 = tpu.matmul %11, %8, %cst {dimension_numbers = #tpu.dot_dimension_numbers<[1], [0], [0], [1], [0, 0, 1, 1], [], []>} : vector<32x32xf32>, vector<32x128xf32>, vector<32x128xf32> -> vector<32x128xf32>
    %13 = vector.broadcast %9 : vector<32x1xf32> to vector<32x128xf32>
    %14 = arith.addf %12, %13 : vector<32x128xf32>
    %15 = math.tanh %14 : vector<32x128xf32>
    %c0_8 = arith.constant 0 : index
    %c3 = arith.constant 3 : index
    %16 = vector.load %arg2[%c0_8, %c3] : memref<32x128xf32, #tpu.memory_space<vmem>>, vector<32x1xf32>
    %c1_9 = arith.constant 1 : index
    %c0_10 = arith.constant 0 : index
    %c0_11 = arith.constant 0 : index
    %17 = vector.load %arg3[%c1_9, %c0_10, %c0_11] : memref<2x32x32xf32, #tpu.memory_space<vmem>>, vector<1x32x32xf32>
    %18 = vector.shape_cast %17 : vector<1x32x32xf32> to vector<32x32xf32>
    %cst_12 = arith.constant dense<0.000000e+00> : vector<32x128xf32>
    %19 = tpu.matmul %18, %15, %cst_12 {dimension_numbers = #tpu.dot_dimension_numbers<[1], [0], [0], [1], [0, 0, 1, 1], [], []>} : vector<32x32xf32>, vector<32x128xf32>, vector<32x128xf32> -> vector<32x128xf32>
    %20 = vector.broadcast %16 : vector<32x1xf32> to vector<32x128xf32>
    %21 = arith.addf %19, %20 : vector<32x128xf32>
    %22 = math.tanh %21 : vector<32x128xf32>
    %c0_13 = arith.constant 0 : index
    %c4 = arith.constant 4 : index
    %23 = vector.load %arg2[%c0_13, %c4] : memref<32x128xf32, #tpu.memory_space<vmem>>, vector<32x1xf32>
    %c0_14 = arith.constant 0 : index
    %c5 = arith.constant 5 : index
    %24 = vector.load %arg2[%c0_14, %c5] : memref<32x128xf32, #tpu.memory_space<vmem>>, vector<1x1xf32>
    %25 = vector.broadcast %23 : vector<32x1xf32> to vector<32x128xf32>
    %26 = arith.mulf %22, %25 : vector<32x128xf32>
    %cst_15 = arith.constant dense<0.000000e+00> : vector<128xf32>
    %27 = vector.multi_reduction <add>, %26, %cst_15 [0] : vector<32x128xf32> to vector<128xf32>
    %28 = vector.shape_cast %27 : vector<128xf32> to vector<1x128xf32>
    %29 = vector.broadcast %24 : vector<1x1xf32> to vector<1x128xf32>
    %30 = arith.addf %28, %29 : vector<1x128xf32>
    %c0_16 = arith.constant 0 : index
    %c0_17 = arith.constant 0 : index
    %31 = vector.load %arg4[%c0_16, %c0_17] : memref<1x128xf32, #tpu.memory_space<vmem>>, vector<1x128xf32>
    tpu.vector_store %arg4[%c0_16, %c0_17], %30 {strides = array<i32>} : memref<1x128xf32, #tpu.memory_space<vmem>>, vector<1x128xf32>,
    return
  }
  func.func @transform_0(%arg0: i32) -> (i32, i32) {
    %c0_i32 = arith.constant 0 : i32
    %c0_i32_0 = arith.constant 0 : i32
    return %c0_i32, %arg0 : i32, i32
  }
  func.func @transform_1(%arg0: i32) -> (i32, i32) {
    %c0_i32 = arith.constant 0 : i32
    %c0_i32_0 = arith.constant 0 : i32
    %c0_i32_1 = arith.constant 0 : i32
    return %c0_i32, %c0_i32_0 : i32, i32
  }
  func.func @transform_2(%arg0: i32) -> (i32, i32, i32) {
    %c0_i32 = arith.constant 0 : i32
    %c0_i32_0 = arith.constant 0 : i32
    %c0_i32_1 = arith.constant 0 : i32
    %c0_i32_2 = arith.constant 0 : i32
    return %c0_i32, %c0_i32_0, %c0_i32_1 : i32, i32, i32
  }
  func.func @transform_3(%arg0: i32) -> (i32, i32) {
    %c0_i32 = arith.constant 0 : i32
    %c0_i32_0 = arith.constant 0 : i32
    return %c0_i32, %arg0 : i32, i32
  }
}

</mosaic_0001>

<bundles_post_ra>
// kernel: tpu_custom_call.1
= control target key start
LH: loop header
LB: loop body
LE: loop exit
PB: predicated region body
PF: predicated region fallthrough
CT: control target
= control target key end

     0   :  { %8 = vsyncpa [#allocation3], 0  ;;  %s1296_s0 = inlined_call_operand.hbm [shape: f32[1,256], index: 0, kind: input, shape index: {}]   ;;  %s1297_s1 = inlined_call_operand.hbm [shape: f32[32,128], index: 1, kind: input, shape index: {}]   ;;  %s1298_s2 = inlined_call_operand.hbm [shape: f32[2,32,32], index: 2, kind: input, shape index: {}]   ;;  %s1299_s3 = inlined_call_operand.hbm [shape: f32[1,256], index: 3, kind: output, shape index: {}]  }
   0x1   :  { %10 = vsyncpa [#allocation3 + $0x1], 0 }
   0x2   :  { %11 = vsyncpa [#allocation6], 0 }
   0x3   :  { %12 = vsyncpa [#allocation4], 0 }
   0x4   :  { %14 = vsyncpa [#allocation4 + $0x1], 0  ;;  %s1028_s12 = smov 0   ;;  %s1030_s13 = smov 0  }
   0x5   :  { %s1032_s14 = smov 0   ;;  %s1034_s15 = smov 0  }
   0x6 LB: > { %s1049_s16 = sadd.s32 4294967295, %s994_s15   ;;  %s646_s17 = sadd.s32 4294967294, %s994_s15   ;;  %s994_s15 = sphi %s1034_s15, %s1319_s15   ;;  %s990_s14 = sphi %s1032_s14, %s1318_s14   ;;  %s986_s13 = sphi %s1030_s13, %s1317_s13   ;;  %s982_s12 = sphi %s1028_s12, %s1316_s12  }
   0x7   : > { %p40_p0 = scmp.ne.s32.totalorder %s986_s13, %s982_s12  ;;  %p1300_p1 = scmp.eq.s32.totalorder %s1049_s16, 0 }
   0x8   : > { %p112_p3 = scmp.eq.s32.totalorder %s646_s17, 1  ;;  %p647_p5 = scmp.ge.s32.totalorder %s994_s15, 1 }
   0x9   : > { %p1058_p4 = por %p1300_p1, %p40_p0  ;;  %p119_p7 = scmp.lt.s32.totalorder %s994_s15, 3 }
   0xa   : > { %p1063_p6 = por %p112_p3, %p40_p0  ;;  %s996_s21 = smov [#allocation5]  }
   0xb   : > { %s1303_s18 = scalar_select %p1058_p4, 1, 0 }
   0xc   : > { %s1304_s19 = scalar_select %p1063_p6, 1, 0 }
   0xd   : > { %p1068_p8 = pnand %p647_p5, %p119_p7  ;;  %s131_s22 = sshll.u32 %s996_s21, 4  ;;  %s1072_s22 = int_to_ptr.vmem [resolvable:$true] %s131_s22 }
   0xe   : > { %s997_s24 = smov [#allocation7]   ;;  %s838_s28 = scalar_lea.hbm %s1297_s1, 512 }
   0xf   : > { %p739_p9 = pneg %p1068_p8  ;;  %s144_s25 = sshll.u32 %s997_s24, 4  ;;  %s1083_s25 = int_to_ptr.vmem [resolvable:$true] %s144_s25 }
  0x10   : > { %p839_p12 = scmp.ne.s32.totalorder %s1297_s1, %s838_s28  ;;  %p845_p5 = scmp.lt.u32.totalorder %s838_s28, %s1297_s1 }
  0x11   : > { %p1079_p11 = pnand %p739_p9, %p1300_p1 }
  0x13   : > { %p840_p13 = pneg %p1079_p11 }
  0x15   : > { %p841_p0 = pnand %p840_p13, %p839_p12 }
  0x17   : > { %p842_p3 = pneg %p841_p0 }
  0x19   : > { %p847_p7 = pnand %p845_p5, %p842_p3 }
  0x1b   : > { %850 = shalt.err (!%p847_p7)
}
  0x1c   : > { %s851_s6 = scalar_lea.vmem %s1072_s22, 512  ;;  %p859_p2 = scmp.lt.s32.totalorder %s1072_s22, %s1072_s22 }
  0x1d   : > { %p852_p9 = scmp.ne.s32.totalorder %s1072_s22, %s851_s6  ;;  %p860_p12 = scmp.lt.s32.totalorder %s851_s6, %s851_s6 }
  0x1f   : > { %p854_p10 = pnand %p852_p9, %p840_p13  ;;  %p861_p0 = por %p860_p12, %p859_p2 }
  0x21   : > { %p855_p1 = pneg %p854_p10 }
  0x23   : > { %p862_p6 = pnand %p861_p0, %p855_p1 }
  0x25   : > { %865 = shalt.err (!%p862_p6)
}
  0x26   : > { %s998_s7 = smov 128   ;;  %s999_s8 = smov 8  }
  0x27   : > { %742 = dma.hbm_to_vmem [thread:$0]  (!%p1079_p11), %s1297_s1, 512, %s1072_s22, [#allocation6], %s998_s7, %s998_s7, %s999_s8  }
  0x28   : > { %s866_s21 = scalar_lea.hbm %s1298_s2, 1024 }
  0x29   : > { %p867_p2 = scmp.ne.s32.totalorder %s1298_s2, %s866_s21  ;;  %p873_p10 = scmp.lt.u32.totalorder %s866_s21, %s1298_s2 }
  0x2b   : > { %p869_p1 = pnand %p867_p2, %p840_p13 }
  0x2d   : > { %p870_p6 = pneg %p869_p1 }
  0x2f   : > { %p875_p3 = pnand %p873_p10, %p870_p6 }
  0x31   : > { %878 = shalt.err (!%p875_p3)
}
  0x32   : > { %s879_s22 = scalar_lea.vmem %s1083_s25, 1024  ;;  %p887_p12 = scmp.lt.s32.totalorder %s1083_s25, %s1083_s25 }
  0x33   : > { %p880_p5 = scmp.ne.s32.totalorder %s1083_s25, %s879_s22  ;;  %p888_p0 = scmp.lt.s32.totalorder %s879_s22, %s879_s22 }
  0x35   : > { %p882_p7 = pnand %p880_p5, %p840_p13  ;;  %p889_p2 = por %p888_p0, %p887_p12 }
  0x37   : > { %p883_p9 = pneg %p882_p7 }
  0x39   : > { %p890_p1 = pnand %p889_p2, %p883_p9 }
  0x3b   : > { %893 = shalt.err (!%p890_p1)
}
  0x3c   : > { %745 = dma.hbm_to_vmem [thread:$0]  (!%p1079_p11), %s1298_s2, 1024, %s1083_s25, [#allocation6], %s998_s7, %s998_s7, %s999_s8  }
  0x3d   : > { %s1138_s4 = sadd.s32 1, %s994_s15   ;;  %s27_s23 = sadd.s32 1, %s990_s14 }
  0x3e   : > { %s24_s5 = ssub.s32 %s994_s15, %s1138_s4  ;;  %p34_p13 = scmp.ne.s32.totalorder %s990_s14, %s986_s13 }
  0x3f   : > { %p25_p6 = scmp.eq.s32.totalorder %s24_s5, 0  ;;  %p35_p10 = scmp.eq.s32.totalorder %s994_s15, 0 }
  0x40   : > { %p1307_p3 = scmp.eq.s32.totalorder %s1049_s16, 1  ;;  %p756_p7 = scmp.lt.s32.totalorder %s994_s15, 2 }
  0x41   : > { %s1154_s9 = scalar_select %p25_p6, %s990_s14, %s27_s23  }
  0x42   : > { %p1148_p5 = por %p1307_p3, %p34_p13  ;;  %p36_p9 = por %p35_p10, %p34_p13 }
  0x43   : > { %s158_s10 = sand.u32 1, %s990_s14   ;;  %s651_s11 = sshll.u32 %s994_s15, 4 }
  0x44   : > { %s1308_s6 = scalar_select %p1148_p5, 1, 0 }
  0x45   : > { %s161_s25 = scalar_lea.vmem [#allocation2], %s158_s10  ;;  %s1161_s21 = scalar_lea.hbm %s1296_s0, %s651_s11 }
  0x46   : > { %s168_s7 = sshll.u32 %s161_s25, 4  ;;  %p1165_p11 = pnand %p756_p7, %p36_p9  ;;  %s1163_s7 = int_to_ptr.vmem [resolvable:$true] %s168_s7 }
  0x47   : > { %s159_s26 = scalar_lea.sflag [#allocation3], %s158_s10  ;;  %s894_s27 = scalar_lea.hbm %s1161_s21, 16 }
  0x48   : > { %p895_p12 = scmp.ne.s32.totalorder %s1161_s21, %s894_s27  ;;  %p896_p0 = pneg %p1165_p11 }
  0x49   : > { %s899_s29 = scalar_lea.hbm %s1296_s0, 32  ;;  %p900_p13 = scmp.lt.u32.totalorder %s1161_s21, %s1296_s0 }
  0x4a   : > { %p897_p2 = pnand %p896_p0, %p895_p12  ;;  %p901_p6 = scmp.lt.u32.totalorder %s899_s29, %s894_s27 }
  0x4b   : > { %p903_p3 = scmp.lt.u32.totalorder %s894_s27, %s1161_s21 }
  0x4c   : > { %p898_p1 = pneg %p897_p2  ;;  %p902_p10 = por %p901_p6, %p900_p13 }
  0x4e   : > { %p904_p7 = por %p903_p3, %p902_p10 }
  0x50   : > { %p905_p9 = pnand %p904_p7, %p898_p1 }
  0x52   : > { %908 = shalt.err (!%p905_p9)
}
  0x53   : > { %s909_s5 = scalar_lea.vmem %s1163_s7, 16  ;;  %s1000_s10 = smov [#allocation2]  }
  0x54   : > { %p910_p12 = scmp.ne.s32.totalorder %s1163_s7, %s909_s5  ;;  %s914_s11 = sshll.u32 %s1000_s10, 4  ;;  %s915_s11 = int_to_ptr.vmem [resolvable:$false] %s914_s11 }
  0x55   : > { %s916_s25 = scalar_lea.vmem %s915_s11, 32  ;;  %p917_p4 = scmp.lt.s32.totalorder %s1163_s7, %s915_s11 }
  0x56   : > { %p912_p2 = pnand %p910_p12, %p896_p0  ;;  %p918_p13 = scmp.lt.s32.totalorder %s916_s25, %s909_s5 }
  0x58   : > { %p913_p5 = pneg %p912_p2  ;;  %p919_p6 = por %p918_p13, %p917_p4 }
  0x5a   : > { %p920_p10 = pnand %p919_p6, %p913_p5 }
  0x5c   : > { %923 = shalt.err (!%p920_p10)
}
  0x5d   : > { %749 = dma.hbm_to_vmem [thread:$0]  (!%p1165_p11), %s1161_s21, 16, %s1163_s7, %s159_s26  }
  0x5e   : > { %177 = sbr.rel (%p1068_p8) target bundleno = 768 (0x300), region = 32  ;;  %s1197_s8 = sand.u32 (!%p1068_p8), 1, %s986_s13  }
  0x5f   : > { %s180_s17 = scalar_lea.sflag (!%p1068_p8), [#allocation3], %s1197_s8  ;;  %s182_s27 = scalar_lea.vmem (!%p1068_p8), [#allocation2], %s1197_s8 }
  0x60   : > { %p1310_p0 = scmp.ne.s32.totalorder (!%p1068_p8), %s1303_s18, 0 }
  0x65   : > { %969 = dma.done.wait (%p1310_p0), %s180_s17, 16  }
  0x66   : > { %971 = vsyncadd (%p1310_p0), %s180_s17, 4294967280  ;;  %p1311_p4 = scmp.eq.s32.totalorder %s1049_s16, 0 }
  0x68   : > { %973 = dma.done.wait (%p1311_p4), [#allocation6], 1536   ;;  %p1312_p5 = pmov %p1311_p4 }
  0x69   : > { %v1001_v0 = vmov 1   ;;  %v1002_v1 = vmov 0   ;;  %v1209_v2 = vld [vmem:[#allocation5] sm:$0xff]  ;;  %v1213_v3 = vld [vmem:[#allocation5 + $0x8] sm:$0xff]  ;;  %v1217_v4 = vld [vmem:[#allocation5 + $0x10] sm:$0xff]  ;;  %vm290_vm0 = vcmask 261120  }
  0x6a   : > { %975 = vsyncadd (%p1312_p5), [#allocation6], 4294965760  ;;  %803 = vset.pattern.permute.xlu1 %v1001_v0  ;;  %802 = vset.pattern.permute.xlu0 %v1002_v1  ;;  %v1219_v5 = vld [vmem:[#allocation5 + $0x18] sm:$0xff]  ;;  %v270_v6 = vld [vmem:[#allocation7] sm:$0xff]  ;;  %v1003_v7 = vmov 2   ;;  %v1004_v35 = vmov 3  }
  0x6b   : > { %247 = vperm.xlu1 %803, %v1209_v2   ;;  %218 = vperm.xlu0 %802, %v1209_v2   ;;  %v655_v8 = vld [vmem:[%s182_s27] ss:$0 sm:$0xff]  ;;  %v271_v31 = vld [vmem:[#allocation7 + $0x8] sm:$0xff]  ;;  %v272_v32 = vld [vmem:[#allocation7 + $0x10] sm:$0xff]  ;;  %v1005_v36 = vmov 4   ;;  %v1006_v38 = vmov 5  }
  0x6c   : > { %691 = vmatprep.mubr.msk.f32.mxu0 %vm290_vm0, %v270_v6  ;;  %v273_v33 = vld [vmem:[#allocation7 + $0x18] sm:$0xff]  ;;  %v393_v34 = vld [vmem:[#allocation7 + $0x20] sm:$0xff]  ;;  %v394_v57 = vld [vmem:[#allocation7 + $0x28] sm:$0xff]  ;;  %s664_s18 = sshll.u32 %s1049_s16, 4  ;;  %s210_s20 = scalar_lea.vmem [#allocation8], %s1197_s8 }
  0x6d   : > { %705 = vmatprep.mubr.msk.f32.mxu1 %vm290_vm0, %v393_v34  ;;  %v514_v37 = vld [vmem:[#allocation5] sm:$0x1]  ;;  %v395_v58 = vld [vmem:[#allocation7 + $0x30] sm:$0xff]  ;;  %v396_v59 = vld [vmem:[#allocation7 + $0x38] sm:$0xff]  ;;  %s564_s7 = sshll.u32 %s210_s20, 4  ;;  %s1252_s26 = scalar_lea.hbm %s1299_s3, %s664_s18  ;;  %s1254_s7 = int_to_ptr.vmem [resolvable:$true] %s564_s7 }
  0x6e   : > { %s552_s28 = scalar_lea.sflag [#allocation4], %s1197_s8  ;;  %s924_s22 = scalar_lea.vmem %s1254_s7, 16 }
  0x6f   : > { %251 = vperm.xlu1 %803, %v1213_v3   ;;  %223 = vperm.xlu0 %802, %v1213_v3   ;;  %p925_p8 = scmp.ne.s32.totalorder %s1254_s7, %s924_s22  ;;  %p1313_p11 = scmp.ne.s32.totalorder %s1308_s6, 0 }
  0x70   : > { %s1007_s16 = smov [#allocation8]  }
  0x71   : > { %p926_p1 = pnand %p925_p8, %p1313_p11  ;;  %s928_s29 = sshll.u32 %s1007_s16, 4  ;;  %s929_s29 = int_to_ptr.vmem [resolvable:$false] %s928_s29 }
  0x72   : > { %s930_s30 = scalar_lea.vmem %s929_s29, 32  ;;  %p931_p7 = scmp.lt.s32.totalorder %s1254_s7, %s929_s29 }
  0x73   : > { %804 = vset.pattern.permute.xlu1 %v1002_v1  ;;  %228 = vperm.xlu0 %802, %v1217_v4   ;;  %p927_p3 = pneg %p926_p1  ;;  %p932_p9 = scmp.lt.s32.totalorder %s930_s30, %s924_s22 }
  0x74   : > { %233 = vperm.xlu1 %804, %v1219_v5  }
  0x75   : > { %p933_p12 = por %p932_p9, %p931_p7 }
  0x77   : > { %805 = vset.pattern.permute.xlu0 %v1001_v0  ;;  %p934_p2 = pnand %p933_p12, %p927_p3 }
  0x78   : > { %806 = vset.pattern.permute.xlu1 %v1001_v0  ;;  %255 = vperm.xlu0 %805, %v1217_v4  }
  0x79   : > { %259 = vperm.xlu1 %806, %v1219_v5  }
  0x7c   : > { %808 = vset.pattern.permute.xlu0 %v1003_v7 }
  0x7d   : > { %807 = vset.pattern.permute.xlu1 %v1003_v7  ;;  %279 = vperm.xlu0 %808, %v1213_v3  }
  0x7e   : > { %275 = vperm.xlu1 %807, %v1209_v2  }
  0x81   : > { %809 = vset.pattern.permute.xlu0 %v1004_v35 }
  0x82   : > { %283 = vperm.xlu1 %807, %v1217_v4   ;;  %398 = vperm.xlu0 %809, %v1209_v2  }
  0x86   : > { %287 = vperm.xlu1 %807, %v1219_v5   ;;  %410 = vperm.xlu0 %809, %v1219_v5  }
  0x8a   : > { %810 = vset.pattern.permute.xlu1 %v1004_v35  ;;  %812 = vset.pattern.permute.xlu0 %v1005_v36 }
  0x8b   : > { %402 = vperm.xlu1 %810, %v1213_v3   ;;  %520 = vperm.xlu0 %812, %v1213_v3  }
  0x8f   : > { %406 = vperm.xlu1 %810, %v1217_v4   ;;  %813 = vset.pattern.permute.xlu0 %v1006_v38 }
  0x90   : > { %546 = vperm.xlu0 %813, %v514_v37  }
  0x93   : > { %811 = vset.pattern.permute.xlu1 %v1005_v36 }
  0x94   : > { %516 = vperm.xlu1 %811, %v1209_v2  }
  0x98   : > { %524 = vperm.xlu1 %811, %v1217_v4  }
  0x9c   : > { %528 = vperm.xlu1 %811, %v1219_v5  }
  0xea   : > { %v248_v9 = vpop.permute.xlu1 %247  ;;  %v219_v10 = vpop.permute.xlu0 %218 }
  0xeb   : > { %v242_v11 = vmul.f32 %v655_v8, %v219_v10 }
  0xed   : > { %v262_v12 = vadd.f32 %v248_v9, %v242_v11 }
  0xee   : > { %v252_v13 = vpop.permute.xlu1 %251  ;;  %v224_v14 = vpop.permute.xlu0 %223 }
  0xef   : > { %v243_v15 = vmul.f32 %v655_v8, %v224_v14  ;;  %814 = vtanh.f32 %v262_v12 }
  0xf1   : > { %v263_v16 = vadd.f32 %v252_v13, %v243_v15 }
  0xf2   : > { %v229_v17 = vpop.permute.xlu0 %228 }
  0xf3   : > { %816 = vtanh.f32 %v263_v16  ;;  %v234_v18 = vpop.permute.xlu1 %233  ;;  %v244_v19 = vmul.f32 %v655_v8, %v229_v17 }
  0xf4   : > { %v245_v20 = vmul.f32 %v655_v8, %v234_v18 }
  0xf7   : > { %v256_v21 = vpop.permute.xlu0 %255 }
  0xf8   : > { %v264_v22 = vadd.f32 %v256_v21, %v244_v19  ;;  %v260_v23 = vpop.permute.xlu1 %259 }
  0xf9   : > { %v265_v24 = vadd.f32 %v260_v23, %v245_v20  ;;  %v815_v25 = vpop.eup %814 }
  0xfa   : > { %818 = vtanh.f32 %v264_v22 }
  0xfb   : > { %820 = vtanh.f32 %v265_v24 }
  0xfc   : > { %v280_v41 = vpop.permute.xlu0 %279 }
  0xfd   : > { %v817_v26 = vpop.eup %816  ;;  %v276_v39 = vpop.permute.xlu1 %275 }
  0xfe   : > { %v711_v27 = vpack.c.bf16 %v817_v26, %v815_v25 }
 0x100   : > { %712 = vmatprep.subr.bf16.mxu0 %v711_v27 }
 0x101   : > { %714 = vmatpush3.bf16.msra.mxu0 %v711_v27  ;;  %v284_v40 = vpop.permute.xlu1 %283  ;;  %v399_v61 = vpop.permute.xlu0 %398 }
 0x104   : > { %v819_v28 = vpop.eup %818 }
 0x105   : > { %v821_v29 = vpop.eup %820  ;;  %v288_v46 = vpop.permute.xlu1 %287 }
 0x106   : > { %v715_v30 = vpack.c.bf16 %v821_v29, %v819_v28  ;;  %v411_v3 = vpop.permute.xlu0 %410 }
 0x108   : > { %716 = vmatprep.subr.bf16.mxu0 %v715_v30 }
 0x109   : > { %718 = vmatpush3.bf16.msra.mxu0 %v715_v30 }
 0x10a   : > { %v403_v60 = vpop.permute.xlu1 %402  ;;  %v521_v9 = vpop.permute.xlu0 %520 }
 0x10c   : > { %692 = vmatmul.mubr.msk.f32.vlgmr.msra.gmra.mrb[0].mxu0 %vm290_vm0, %v271_v31 }
 0x10d   : > { %694 = vmatprep.mubr.msk.f32.mxu0 %vm290_vm0, %v272_v32 }
 0x10e   : > { %v407_v1 = vpop.permute.xlu1 %406 }
 0x10f   : > { %v547_v28 = vpop.permute.xlu0 %546 }
 0x110   : > { %695 = vmatmul.mubr.msk.f32.gmra.mrb[2].mxu0 %vm290_vm0, %v273_v33 }
 0x113   : > { %v517_v8 = vpop.permute.xlu1 %516 }
 0x117   : > { %v525_v12 = vpop.permute.xlu1 %524 }
 0x11b   : > { %v529_v19 = vpop.permute.xlu1 %528 }
 0x1df   : > { %v693_v42 = vpop.f32.mrb[0].mxu0 }
 0x1e0   : > { %v375_v43 = vadd.f32 %v693_v42, %v280_v41  ;;  %v369_v44 = vpop.f32.mrb[1].mxu0 }
 0x1e1   : > { %v370_v45 = vadd.f32 %v369_v44, %v276_v39 }
 0x1e2   : > { %822 = vtanh.f32 %v375_v43 }
 0x1e3   : > { %824 = vtanh.f32 %v370_v45  ;;  %v696_v47 = vpop.f32.mrb[2].mxu0 }
 0x1e4   : > { %v385_v48 = vadd.f32 %v696_v47, %v288_v46  ;;  %v379_v49 = vpop.f32.mrb[3].mxu0 }
 0x1e5   : > { %v380_v50 = vadd.f32 %v379_v49, %v284_v40 }
 0x1e6   : > { %826 = vtanh.f32 %v385_v48 }
 0x1e7   : > { %828 = vtanh.f32 %v380_v50 }
 0x1ec   : > { %v823_v51 = vpop.eup %822 }
 0x1ed   : > { %v825_v52 = vpop.eup %824 }
 0x1ee   : > { %v719_v53 = vpack.c.bf16 %v823_v51, %v825_v52 }
 0x1f0   : > { %v827_v54 = vpop.eup %826  ;;  %720 = vmatprep.subr.bf16.mxu1 %v719_v53 }
 0x1f1   : > { %v829_v55 = vpop.eup %828  ;;  %722 = vmatpush3.bf16.msra.mxu1 %v719_v53 }
 0x1f2   : > { %v723_v56 = vpack.c.bf16 %v827_v54, %v829_v55 }
 0x1f4   : > { %724 = vmatprep.subr.bf16.mxu1 %v723_v56 }
 0x1f5   : > { %726 = vmatpush3.bf16.msra.mxu1 %v723_v56 }
 0x1f8   : > { %706 = vmatmul.mubr.msk.f32.vlgmr.msra.gmra.mrb[0].mxu1 %vm290_vm0, %v394_v57 }
 0x1f9   : > { %708 = vmatprep.mubr.msk.f32.mxu1 %vm290_vm0, %v395_v58 }
 0x1fc   : > { %709 = vmatmul.mubr.msk.f32.gmra.mrb[2].mxu1 %vm290_vm0, %v396_v59 }
 0x2cb   : > { %v707_v62 = vpop.f32.mrb[0].mxu1 }
 0x2cc   : > { %v497_v63 = vadd.f32 %v707_v62, %v403_v60  ;;  %v491_v0 = vpop.f32.mrb[1].mxu1 }
 0x2cd   : > { %v492_v2 = vadd.f32 %v491_v0, %v399_v61 }
 0x2ce   : > { %830 = vtanh.f32 %v497_v63 }
 0x2cf   : > { %832 = vtanh.f32 %v492_v2  ;;  %v710_v4 = vpop.f32.mrb[2].mxu1 }
 0x2d0   : > { %v507_v5 = vadd.f32 %v710_v4, %v411_v3  ;;  %v501_v6 = vpop.f32.mrb[3].mxu1 }
 0x2d1   : > { %v502_v7 = vadd.f32 %v501_v6, %v407_v1 }
 0x2d2   : > { %834 = vtanh.f32 %v507_v5 }
 0x2d3   : > { %836 = vtanh.f32 %v502_v7 }
 0x2d8   : > { %v831_v10 = vpop.eup %830 }
 0x2d9   : > { %v833_v11 = vpop.eup %832  ;;  %v532_v13 = vmul.f32 %v831_v10, %v521_v9 }
 0x2da   : > { %v531_v14 = vmul.f32 %v833_v11, %v517_v8 }
 0x2dc   : > { %v835_v15 = vpop.eup %834  ;;  %v535_v16 = vadd.f32 %v532_v13, %v531_v14 }
 0x2dd   : > { %v837_v17 = vpop.eup %836  ;;  %v534_v20 = vmul.f32 %v835_v15, %v529_v19 }
 0x2de   : > { %v533_v18 = vmul.f32 %v837_v17, %v525_v12 }
 0x2e0   : > { %v536_v21 = vadd.f32 %v535_v16, %v533_v18 }
 0x2e2   : > { %v537_v22 = vadd.f32 %v536_v21, %v534_v20 }
 0x2e4   : > { %v538_v23 = vrot.slane %v537_v22, 4 }
 0x2e6   : > { %v539_v24 = vadd.f32 %v538_v23, %v537_v22 }
 0x2e8   : > { %v540_v25 = vrot.slane %v539_v24, 2 }
 0x2ea   : > { %v541_v26 = vadd.f32 %v540_v25, %v539_v24 }
 0x2ec   : > { %v542_v27 = vrot.slane %v541_v26, 1 }
 0x2ee   : > { %v543_v29 = vadd.f32 %v542_v27, %v541_v26 }
 0x2f0   : > { %v549_v30 = vadd.f32 %v547_v28, %v543_v29 }
 0x2f2   : > { %550 = vst [vmem:[%s210_s20] sm:$0x1] %v549_v30 }
 0x2f3   : > { %937 = shalt.err (!%p934_p2)
}
 0x2f4   : > { %s938_s23 = scalar_lea.hbm %s1252_s26, 16  ;;  %s942_s11 = scalar_lea.hbm %s1299_s3, 32 }
 0x2f5   : > { %p939_p13 = scmp.ne.s32.totalorder %s1252_s26, %s938_s23  ;;  %p943_p0 = scmp.lt.u32.totalorder %s1252_s26, %s1299_s3 }
 0x2f6   : > { %p944_p4 = scmp.lt.u32.totalorder %s942_s11, %s938_s23  ;;  %p946_p8 = scmp.lt.u32.totalorder %s938_s23, %s1252_s26 }
 0x2f7   : > { %p940_p6 = pnand %p939_p13, %p1313_p11 }
 0x2f8   : > { %p945_p5 = por %p944_p4, %p943_p0 }
 0x2f9   : > { %p941_p10 = pneg %p940_p6 }
 0x2fa   : > { %p947_p1 = por %p946_p8, %p945_p5 }
 0x2fc   : > { %p948_p3 = pnand %p947_p1, %p941_p10 }
 0x2fe   : > { %951 = shalt.err (!%p948_p3)
}
 0x2ff   : > { %737 = dma.vmem_to_hbm [thread:$0]  (%p1313_p11), %s1254_s7, 16, %s1252_s26, %s552_s28  }
 0x300 PF: > { %s576_s17 = sand.u32 1, %s982_s12   ;;  %p1314_p7 = scmp.ne.s32.totalorder %s1304_s19, 0 }
 0x301   : > { %p1315_p9 = scmp.ge.s32.totalorder %s994_s15, 2  ;;  %s577_s27 = scalar_lea.sflag [#allocation4], %s576_s17 }
 0x303   : > { %p751_p12 = pnand %p1315_p9, %p1314_p7 }
 0x305   : > { %977 = dma.done.wait (!%p751_p12), %s577_s27, 16  }
 0x306   : > { %979 = vsyncadd (!%p751_p12), %s577_s27, 4294967280  ;;  %p17_p2 = scmp.ge.s32.totalorder %s1138_s4, 4   ;;  %s1316_s12 = smov %s986_s13 }
 0x307   : > { %s1317_s13 = smov %s990_s14  ;;  %s1318_s14 = smov %s1154_s9 }
 0x308   : > { %s1319_s15 = smov %s1138_s4  ;;  %19 = sbr.rel (!%p17_p2) target bundleno = 6 (0x6), region = 86 }
 0x30f   :  { %581 = vsyncpa [#allocation3], 1 }
 0x310   :  { %583 = vsyncpa [#allocation3 + $0x1], 1 }
 0x311   :  { %584 = vsyncpa [#allocation6], 1 }
 0x312   :  { %585 = vsyncpa [#allocation4], 1 }
 0x313   :  { %587 = vsyncpa [#allocation4 + $0x1], 1 }

</bundles_post_ra>
